<compile_context>
chip_gen: v7x
topology: tpu7x:2x2x1
jax: 0.10.0
libtpu: 0.0.40
codegen_flags: <defaults>
</compile_context>

<pallas_src>
import jax
import jax.numpy as jnp
from jax.experimental import pallas as pl
from jax.experimental.pallas import tpu as pltpu

FP = 128          # padded feature width (lane dim) == default h_dim / out_dim
FW = 2 * FP       # packed slab lane width


# --------------------------------- kernel -----------------------------------

def encoder_kernel(x_ref, w_ref, b_ref, out_ref, h1_ref, h2_ref):
    def fused_pair(h, ti, bi):
        # [shortcut | long0] as one N=256 matmul, bf16 operands, f32 accumulate
        w = w_ref[pl.ds(ti * FP, FP), :]                       # (FP, FW) bf16
        y = jnp.dot(h.astype(jnp.bfloat16), w,
                    preferred_element_type=jnp.float32)
        y = jnp.maximum(y + b_ref[pl.ds(bi, 1), :], 0.0)       # both biases + ReLU
        return y[:, :FP], y[:, FP:]                            # (sc, long0)

    def lin_half(h, ti, col, bi, bcol):
        w = w_ref[pl.ds(ti * FP, FP), pl.ds(col * FP, FP)]     # (FP, FP) bf16
        y = jnp.dot(h.astype(jnp.bfloat16), w,
                    preferred_element_type=jnp.float32)
        return y + b_ref[pl.ds(bi, 1), pl.ds(bcol * FP, FP)]

    def res_block(h, ti0, bi0):
        sc, lp = fused_pair(h, ti0, bi0)                       # ReLU already applied
        lp = jnp.maximum(lin_half(lp, ti0 + 1, 0, bi0 + 1, 0), 0.0)   # long1
        lp = jnp.maximum(lin_half(lp, ti0 + 1, 1, bi0 + 1, 1), 0.0)   # long2
        y = sc + lp
        # LayerNorm over the (full, real) 128-lane feature dim, f32
        mean = jnp.mean(y, axis=-1, keepdims=True)
        var = jnp.mean(jnp.square(y - mean), axis=-1, keepdims=True)
        yhat = (y - mean) * jax.lax.rsqrt(var + 1e-5)
        gamma = b_ref[pl.ds(bi0 + 2, 1), pl.ds(0, FP)]
        beta = b_ref[pl.ds(bi0 + 2, 1), pl.ds(FP, FP)]
        return yhat * gamma + beta

    x = x_ref[...]
    h1 = res_block(x, 0, 0)
    h1_ref[...] = h1                    # store early: frees live range before blk 2
    h2 = res_block(h1, 2, 3)
    h2_ref[...] = h2
    out_ref[...] = jnp.tanh(lin_half(h2, 4, 0, 6, 0))


# ------------------------------ parameters -----------------------------------

def init_encoder_params(key, in_dim, h_dim, out_dim):
    """PyTorch-default init. Returns raw (unpadded) per-layer params.
    Weights are stored already transposed: W has shape (nin, nout), y = x @ W + b."""
    nh1, nh2 = in_dim // 2, h_dim // 2
    shapes = [("fc1.sc", in_dim, h_dim), ("fc1.l0", in_dim, nh1),
              ("fc1.l1", nh1, nh1), ("fc1.l2", nh1, h_dim),
              ("fc2.sc", h_dim, h_dim), ("fc2.l0", h_dim, nh2),
              ("fc2.l1", nh2, nh2), ("fc2.l2", nh2, h_dim),
              ("fc3", h_dim, out_dim)]
    keys = jax.random.split(key, len(shapes))
    params = {}
    for k, (name, nin, nout) in zip(keys, shapes):
        kw, kb = jax.random.split(k)
        bound = 1.0 / (nin ** 0.5)
        params[name] = (
            jax.random.uniform(kw, (nin, nout), jnp.float32, -bound, bound),
            jax.random.uniform(kb, (nout,), jnp.float32, -bound, bound))
    # LayerNorm affine (trainable; PyTorch default init here)
    params["fc1.ln"] = (jnp.ones((h_dim,), jnp.float32), jnp.zeros((h_dim,), jnp.float32))
    params["fc2.ln"] = (jnp.ones((h_dim,), jnp.float32), jnp.zeros((h_dim,), jnp.float32))
    return params


def pack_encoder_params(params, fp=FP):
    """Pack into (5*fp, 2*fp) bf16 weight slab + (7, 2*fp) f32 bias/LN slab."""
    def padw(w):
        return jnp.zeros((fp, fp), jnp.float32).at[: w.shape[0], : w.shape[1]].set(w)

    def padb(b):
        return jnp.zeros((fp,), jnp.float32).at[: b.shape[0]].set(b)

    def wpair(a, b):
        return jnp.concatenate([padw(a), padw(b)], axis=1)          # (fp, 2*fp)

    def bpair(a, b):
        return jnp.concatenate([padb(a), padb(b)], axis=0)          # (2*fp,)

    zW = jnp.zeros((fp, fp), jnp.float32)
    zb = jnp.zeros((fp,), jnp.float32)
    w_slab = jnp.concatenate([
        wpair(params["fc1.sc"][0], params["fc1.l0"][0]),
        wpair(params["fc1.l1"][0], params["fc1.l2"][0]),
        wpair(params["fc2.sc"][0], params["fc2.l0"][0]),
        wpair(params["fc2.l1"][0], params["fc2.l2"][0]),
        wpair(params["fc3"][0], zW),
    ], axis=0).astype(jnp.bfloat16)                                  # (5*fp, 2*fp)

    b_slab = jnp.stack([
        bpair(params["fc1.sc"][1], params["fc1.l0"][1]),
        bpair(params["fc1.l1"][1], params["fc1.l2"][1]),
        bpair(*params["fc1.ln"]),
        bpair(params["fc2.sc"][1], params["fc2.l0"][1]),
        bpair(params["fc2.l1"][1], params["fc2.l2"][1]),
        bpair(*params["fc2.ln"]),
        bpair(params["fc3"][1], zb),
    ], axis=0)                                                       # (7, 2*fp) f32
    return w_slab, b_slab


# --------------------------------- wrapper -----------------------------------

def encoder_forward(x, w_slab, b_slab, *, in_dim, h_dim, out_dim, fp=FP):
    assert h_dim == fp and out_dim == fp
    bs = x.shape[0]
    x2d = x.reshape(bs, -1).astype(jnp.float32)                  # input.view(bs, -1)
    assert x2d.shape[1] == in_dim

    # batch tiling: up to 512 rows/tile; keep grid >= 2 when the batch allows
    # so the "parallel" axis shards across both TensorCores on v7x.
    bpad = -(-bs // 8) * 8
    tb = min(512, bpad)
    if bpad > 8 and bpad // tb < 2:
        tb = -(-(bpad // 2) // 8) * 8
    bpad = -(-bpad // tb) * tb

    # lane pad (in_dim -> 128) + batch pad; allow_input_fusion lets XLA fuse it
    # into the pallas_call operand instead of materializing a padded HBM copy.
    xp = jnp.pad(x2d, ((0, bpad - bs), (0, fp - in_dim)))

    row_spec = pl.BlockSpec((tb, fp), lambda i: (i, 0))
    out, h1, h2 = pl.pallas_call(
        encoder_kernel,
        out_shape=(jax.ShapeDtypeStruct((bpad, fp), jnp.float32),) * 3,
        grid=(bpad // tb,),
        in_specs=[row_spec,
                  pl.BlockSpec(w_slab.shape, lambda i: (0, 0)),   # VMEM-resident slab
                  pl.BlockSpec(b_slab.shape, lambda i: (0, 0))],  # VMEM-resident slab
        out_specs=(row_spec, row_spec, row_spec),
        compiler_params=pltpu.CompilerParams(
            dimension_semantics=("parallel",),
            allow_input_fusion=[True, False, False]),
    )(xp, w_slab, b_slab)
    return out[:bs, :out_dim], [h1[:bs, :h_dim], h2[:bs, :h_dim]]


# ------------------- pure-JAX reference (unpadded params) --------------------

def encoder_reference(x2d, params):
    """PyTorch-equivalent math on the raw (unpadded) parameters, with the same
    bf16-operand / f32-accumulate matmul precision as the kernel."""
    def lin(h, name):
        w, b = params[name]
        return jnp.dot(h.astype(jnp.bfloat16), w.astype(jnp.bfloat16),
                       preferred_element_type=jnp.float32) + b

    def block(h, pre):
        sc = jax.nn.relu(lin(h, pre + ".sc"))
        lp = jax.nn.relu(lin(h, pre + ".l0"))
        lp = jax.nn.relu(lin(lp, pre + ".l1"))
        lp = jax.nn.relu(lin(lp, pre + ".l2"))
        y = sc + lp
        m = y.mean(-1, keepdims=True)
        v = jnp.square(y - m).mean(-1, keepdims=True)
        g, beta = params[pre + ".ln"]
        return (y - m) * jax.lax.rsqrt(v + 1e-5) * g + beta

    h1 = block(x2d, "fc1")
    h2 = block(h1, "fc2")
    return jnp.tanh(lin(h2, "fc3")), h1, h2


# ----------------------------------- main ------------------------------------

if __name__ == "__main__":
    # Module defaults: in_dim = 17*3 = 51, h_dim = out_dim = 128.
    bs, n_joints, coord = 8, 17, 3
    in_dim = n_joints * coord
    h_dim, out_dim = 128, 128

    key = jax.random.PRNGKey(0)
    kx, kp = jax.random.split(key)
    x = jax.random.normal(kx, (bs, n_joints, coord), dtype=jnp.float32)

    params = init_encoder_params(kp, in_dim, h_dim, out_dim)
    w_slab, b_slab = pack_encoder_params(params)

    out, (h1, h2) = encoder_forward(x, w_slab, b_slab,
                                    in_dim=in_dim, h_dim=h_dim, out_dim=out_dim)
    jax.block_until_ready((out, h1, h2))

    assert out.shape == (bs, out_dim)
    assert h1.shape == (bs, h_dim)
    assert h2.shape == (bs, h_dim)

    # numeric check against an UNPADDED PyTorch-equivalent reference
    ref_out, ref_h1, ref_h2 = encoder_reference(x.reshape(bs, -1), params)
    assert jnp.max(jnp.abs(out - ref_out)) < 2e-2
    assert jnp.max(jnp.abs(h1 - ref_h1)) < 2e-2
    assert jnp.max(jnp.abs(h2 - ref_h2)) < 2e-2

    print("KERNEL_OK")
</pallas_src>

<mosaic_0001>
module attributes {stable_mosaic.version = 11 : i64} {
  func.func @encoder_kernel(%arg0: i32, %arg1: memref<8x128xf32, #tpu.memory_space<vmem>>, %arg2: memref<640x256xbf16, #tpu.memory_space<vmem>>, %arg3: memref<7x256xf32, #tpu.memory_space<vmem>>, %arg4: memref<8x128xf32, #tpu.memory_space<vmem>>, %arg5: memref<8x128xf32, #tpu.memory_space<vmem>>, %arg6: memref<8x128xf32, #tpu.memory_space<vmem>>) attributes {dimension_semantics = [#tpu.dimension_semantics<parallel>], iteration_bounds = array<i64: 1>, scalar_prefetch = 0 : i64, scratch_operands = 0 : i64, tpu.core_type = #tpu.core_type<tc>, window_params = [{transform_indices = @transform_0, window_bounds = array<i64: 8, 128>}, {pipeline_mode = #tpu.pipeline_mode<synchronous>, transform_indices = @transform_1, window_bounds = array<i64: 640, 256>}, {pipeline_mode = #tpu.pipeline_mode<synchronous>, transform_indices = @transform_2, window_bounds = array<i64: 7, 256>}, {transform_indices = @transform_3, window_bounds = array<i64: 8, 128>}, {transform_indices = @transform_4, window_bounds = array<i64: 8, 128>}, {transform_indices = @transform_5, window_bounds = array<i64: 8, 128>}]} {
    %c0 = arith.constant 0 : index
    %c0_0 = arith.constant 0 : index
    %0 = vector.load %arg1[%c0, %c0_0] : memref<8x128xf32, #tpu.memory_space<vmem>>, vector<8x128xf32>
    %c0_1 = arith.constant 0 : index
    %c0_2 = arith.constant 0 : index
    %1 = vector.load %arg2[%c0_1, %c0_2] : memref<640x256xbf16, #tpu.memory_space<vmem>>, vector<128x256xbf16>
    %2 = arith.truncf %0 : vector<8x128xf32> to vector<8x128xbf16>
    %cst = arith.constant dense<0.000000e+00> : vector<8x256xf32>
    %3 = tpu.matmul %2, %1, %cst {dimension_numbers = #tpu.dot_dimension_numbers<[1], [0], [0], [1], [0, 0, 1, 1], [], []>} : vector<8x128xbf16>, vector<128x256xbf16>, vector<8x256xf32> -> vector<8x256xf32>
    %c0_3 = arith.constant 0 : index
    %c0_4 = arith.constant 0 : index
    %4 = vector.load %arg3[%c0_3, %c0_4] : memref<7x256xf32, #tpu.memory_space<vmem>>, vector<1x256xf32>
    %5 = vector.broadcast %4 : vector<1x256xf32> to vector<8x256xf32>
    %6 = arith.addf %3, %5 : vector<8x256xf32>
    %cst_5 = arith.constant 0.000000e+00 : f32
    %7 = vector.broadcast %cst_5 : f32 to vector<8x256xf32>
    %8 = arith.maximumf %6, %7 : vector<8x256xf32>
    %9 = vector.extract_strided_slice %8 {offsets = [0, 0], sizes = [8, 128], strides = [1, 1]} : vector<8x256xf32> to vector<8x128xf32>
    %10 = vector.extract_strided_slice %8 {offsets = [0, 128], sizes = [8, 128], strides = [1, 1]} : vector<8x256xf32> to vector<8x128xf32>
    %c128 = arith.constant 128 : index
    %c0_6 = arith.constant 0 : index
    %11 = vector.load %arg2[%c128, %c0_6] : memref<640x256xbf16, #tpu.memory_space<vmem>>, vector<128x128xbf16>
    %12 = arith.truncf %10 : vector<8x128xf32> to vector<8x128xbf16>
    %cst_7 = arith.constant dense<0.000000e+00> : vector<8x128xf32>
    %13 = tpu.matmul %12, %11, %cst_7 {dimension_numbers = #tpu.dot_dimension_numbers<[1], [0], [0], [1], [0, 0, 1, 1], [], []>} : vector<8x128xbf16>, vector<128x128xbf16>, vector<8x128xf32> -> vector<8x128xf32>
    %c1 = arith.constant 1 : index
    %c0_8 = arith.constant 0 : index
    %14 = vector.load %arg3[%c1, %c0_8] : memref<7x256xf32, #tpu.memory_space<vmem>>, vector<1x128xf32>
    %15 = vector.broadcast %14 : vector<1x128xf32> to vector<8x128xf32>
    %16 = arith.addf %13, %15 : vector<8x128xf32>
    %cst_9 = arith.constant 0.000000e+00 : f32
    %17 = vector.broadcast %cst_9 : f32 to vector<8x128xf32>
    %18 = arith.maximumf %16, %17 : vector<8x128xf32>
    %c128_10 = arith.constant 128 : index
    %c128_11 = arith.constant 128 : index
    %19 = vector.load %arg2[%c128_10, %c128_11] : memref<640x256xbf16, #tpu.memory_space<vmem>>, vector<128x128xbf16>
    %20 = arith.truncf %18 : vector<8x128xf32> to vector<8x128xbf16>
    %cst_12 = arith.constant dense<0.000000e+00> : vector<8x128xf32>
    %21 = tpu.matmul %20, %19, %cst_12 {dimension_numbers = #tpu.dot_dimension_numbers<[1], [0], [0], [1], [0, 0, 1, 1], [], []>} : vector<8x128xbf16>, vector<128x128xbf16>, vector<8x128xf32> -> vector<8x128xf32>
    %c1_13 = arith.constant 1 : index
    %c128_14 = arith.constant 128 : index
    %22 = vector.load %arg3[%c1_13, %c128_14] : memref<7x256xf32, #tpu.memory_space<vmem>>, vector<1x128xf32>
    %23 = vector.broadcast %22 : vector<1x128xf32> to vector<8x128xf32>
    %24 = arith.addf %21, %23 : vector<8x128xf32>
    %cst_15 = arith.constant 0.000000e+00 : f32
    %25 = vector.broadcast %cst_15 : f32 to vector<8x128xf32>
    %26 = arith.maximumf %24, %25 : vector<8x128xf32>
    %27 = arith.addf %9, %26 : vector<8x128xf32>
    %cst_16 = arith.constant dense<0.000000e+00> : vector<8xf32>
    %28 = vector.multi_reduction <add>, %27, %cst_16 [1] : vector<8x128xf32> to vector<8xf32>
    %29 = vector.shape_cast %28 : vector<8xf32> to vector<8x1xf32>
    %cst_17 = arith.constant 1.280000e+02 : f32
    %30 = vector.broadcast %cst_17 : f32 to vector<8x1xf32>
    %31 = arith.divf %29, %30 : vector<8x1xf32>
    %32 = vector.broadcast %31 : vector<8x1xf32> to vector<8x128xf32>
    %33 = arith.subf %27, %32 : vector<8x128xf32>
    %34 = arith.mulf %33, %33 : vector<8x128xf32>
    %cst_18 = arith.constant dense<0.000000e+00> : vector<8xf32>
    %35 = vector.multi_reduction <add>, %34, %cst_18 [1] : vector<8x128xf32> to vector<8xf32>
    %36 = vector.shape_cast %35 : vector<8xf32> to vector<8x1xf32>
    %cst_19 = arith.constant 1.280000e+02 : f32
    %37 = vector.broadcast %cst_19 : f32 to vector<8x1xf32>
    %38 = arith.divf %36, %37 : vector<8x1xf32>
    %39 = vector.broadcast %31 : vector<8x1xf32> to vector<8x128xf32>
    %40 = arith.subf %27, %39 : vector<8x128xf32>
    %cst_20 = arith.constant 9.99999974E-6 : f32
    %41 = vector.broadcast %cst_20 : f32 to vector<8x1xf32>
    %42 = arith.addf %38, %41 : vector<8x1xf32>
    %43 = math.rsqrt %42 : vector<8x1xf32>
    %44 = vector.broadcast %43 : vector<8x1xf32> to vector<8x128xf32>
    %45 = arith.mulf %40, %44 : vector<8x128xf32>
    %c2 = arith.constant 2 : index
    %c0_21 = arith.constant 0 : index
    %46 = vector.load %arg3[%c2, %c0_21] : memref<7x256xf32, #tpu.memory_space<vmem>>, vector<1x128xf32>
    %c2_22 = arith.constant 2 : index
    %c128_23 = arith.constant 128 : index
    %47 = vector.load %arg3[%c2_22, %c128_23] : memref<7x256xf32, #tpu.memory_space<vmem>>, vector<1x128xf32>
    %48 = vector.broadcast %46 : vector<1x128xf32> to vector<8x128xf32>
    %49 = arith.mulf %45, %48 : vector<8x128xf32>
    %50 = vector.broadcast %47 : vector<1x128xf32> to vector<8x128xf32>
    %51 = arith.addf %49, %50 : vector<8x128xf32>
    %c0_24 = arith.constant 0 : index
    %c0_25 = arith.constant 0 : index
    %52 = vector.load %arg5[%c0_24, %c0_25] : memref<8x128xf32, #tpu.memory_space<vmem>>, vector<8x128xf32>
    tpu.vector_store %arg5[%c0_24, %c0_25], %51 {strides = array<i32>} : memref<8x128xf32, #tpu.memory_space<vmem>>, vector<8x128xf32>,
    %c256 = arith.constant 256 : index
    %c0_26 = arith.constant 0 : index
    %53 = vector.load %arg2[%c256, %c0_26] : memref<640x256xbf16, #tpu.memory_space<vmem>>, vector<128x256xbf16>
    %54 = arith.truncf %51 : vector<8x128xf32> to vector<8x128xbf16>
    %cst_27 = arith.constant dense<0.000000e+00> : vector<8x256xf32>
    %55 = tpu.matmul %54, %53, %cst_27 {dimension_numbers = #tpu.dot_dimension_numbers<[1], [0], [0], [1], [0, 0, 1, 1], [], []>} : vector<8x128xbf16>, vector<128x256xbf16>, vector<8x256xf32> -> vector<8x256xf32>
    %c3 = arith.constant 3 : index
    %c0_28 = arith.constant 0 : index
    %56 = vector.load %arg3[%c3, %c0_28] : memref<7x256xf32, #tpu.memory_space<vmem>>, vector<1x256xf32>
    %57 = vector.broadcast %56 : vector<1x256xf32> to vector<8x256xf32>
    %58 = arith.addf %55, %57 : vector<8x256xf32>
    %cst_29 = arith.constant 0.000000e+00 : f32
    %59 = vector.broadcast %cst_29 : f32 to vector<8x256xf32>
    %60 = arith.maximumf %58, %59 : vector<8x256xf32>
    %61 = vector.extract_strided_slice %60 {offsets = [0, 0], sizes = [8, 128], strides = [1, 1]} : vector<8x256xf32> to vector<8x128xf32>
    %62 = vector.extract_strided_slice %60 {offsets = [0, 128], sizes = [8, 128], strides = [1, 1]} : vector<8x256xf32> to vector<8x128xf32>
    %c384 = arith.constant 384 : index
    %c0_30 = arith.constant 0 : index
    %63 = vector.load %arg2[%c384, %c0_30] : memref<640x256xbf16, #tpu.memory_space<vmem>>, vector<128x128xbf16>
    %64 = arith.truncf %62 : vector<8x128xf32> to vector<8x128xbf16>
    %cst_31 = arith.constant dense<0.000000e+00> : vector<8x128xf32>
    %65 = tpu.matmul %64, %63, %cst_31 {dimension_numbers = #tpu.dot_dimension_numbers<[1], [0], [0], [1], [0, 0, 1, 1], [], []>} : vector<8x128xbf16>, vector<128x128xbf16>, vector<8x128xf32> -> vector<8x128xf32>
    %c4 = arith.constant 4 : index
    %c0_32 = arith.constant 0 : index
    %66 = vector.load %arg3[%c4, %c0_32] : memref<7x256xf32, #tpu.memory_space<vmem>>, vector<1x128xf32>
    %67 = vector.broadcast %66 : vector<1x128xf32> to vector<8x128xf32>
    %68 = arith.addf %65, %67 : vector<8x128xf32>
    %cst_33 = arith.constant 0.000000e+00 : f32
    %69 = vector.broadcast %cst_33 : f32 to vector<8x128xf32>
    %70 = arith.maximumf %68, %69 : vector<8x128xf32>
    %c384_34 = arith.constant 384 : index
    %c128_35 = arith.constant 128 : index
    %71 = vector.load %arg2[%c384_34, %c128_35] : memref<640x256xbf16, #tpu.memory_space<vmem>>, vector<128x128xbf16>
    %72 = arith.truncf %70 : vector<8x128xf32> to vector<8x128xbf16>
    %cst_36 = arith.constant dense<0.000000e+00> : vector<8x128xf32>
    %73 = tpu.matmul %72, %71, %cst_36 {dimension_numbers = #tpu.dot_dimension_numbers<[1], [0], [0], [1], [0, 0, 1, 1], [], []>} : vector<8x128xbf16>, vector<128x128xbf16>, vector<8x128xf32> -> vector<8x128xf32>
    %c4_37 = arith.constant 4 : index
    %c128_38 = arith.constant 128 : index
    %74 = vector.load %arg3[%c4_37, %c128_38] : memref<7x256xf32, #tpu.memory_space<vmem>>, vector<1x128xf32>
    %75 = vector.broadcast %74 : vector<1x128xf32> to vector<8x128xf32>
    %76 = arith.addf %73, %75 : vector<8x128xf32>
    %cst_39 = arith.constant 0.000000e+00 : f32
    %77 = vector.broadcast %cst_39 : f32 to vector<8x128xf32>
    %78 = arith.maximumf %76, %77 : vector<8x128xf32>
    %79 = arith.addf %61, %78 : vector<8x128xf32>
    %cst_40 = arith.constant dense<0.000000e+00> : vector<8xf32>
    %80 = vector.multi_reduction <add>, %79, %cst_40 [1] : vector<8x128xf32> to vector<8xf32>
    %81 = vector.shape_cast %80 : vector<8xf32> to vector<8x1xf32>
    %cst_41 = arith.constant 1.280000e+02 : f32
    %82 = vector.broadcast %cst_41 : f32 to vector<8x1xf32>
    %83 = arith.divf %81, %82 : vector<8x1xf32>
    %84 = vector.broadcast %83 : vector<8x1xf32> to vector<8x128xf32>
    %85 = arith.subf %79, %84 : vector<8x128xf32>
    %86 = arith.mulf %85, %85 : vector<8x128xf32>
    %cst_42 = arith.constant dense<0.000000e+00> : vector<8xf32>
    %87 = vector.multi_reduction <add>, %86, %cst_42 [1] : vector<8x128xf32> to vector<8xf32>
    %88 = vector.shape_cast %87 : vector<8xf32> to vector<8x1xf32>
    %cst_43 = arith.constant 1.280000e+02 : f32
    %89 = vector.broadcast %cst_43 : f32 to vector<8x1xf32>
    %90 = arith.divf %88, %89 : vector<8x1xf32>
    %91 = vector.broadcast %83 : vector<8x1xf32> to vector<8x128xf32>
    %92 = arith.subf %79, %91 : vector<8x128xf32>
    %cst_44 = arith.constant 9.99999974E-6 : f32
    %93 = vector.broadcast %cst_44 : f32 to vector<8x1xf32>
    %94 = arith.addf %90, %93 : vector<8x1xf32>
    %95 = math.rsqrt %94 : vector<8x1xf32>
    %96 = vector.broadcast %95 : vector<8x1xf32> to vector<8x128xf32>
    %97 = arith.mulf %92, %96 : vector<8x128xf32>
    %c5 = arith.constant 5 : index
    %c0_45 = arith.constant 0 : index
    %98 = vector.load %arg3[%c5, %c0_45] : memref<7x256xf32, #tpu.memory_space<vmem>>, vector<1x128xf32>
    %c5_46 = arith.constant 5 : index
    %c128_47 = arith.constant 128 : index
    %99 = vector.load %arg3[%c5_46, %c128_47] : memref<7x256xf32, #tpu.memory_space<vmem>>, vector<1x128xf32>
    %100 = vector.broadcast %98 : vector<1x128xf32> to vector<8x128xf32>
    %101 = arith.mulf %97, %100 : vector<8x128xf32>
    %102 = vector.broadcast %99 : vector<1x128xf32> to vector<8x128xf32>
    %103 = arith.addf %101, %102 : vector<8x128xf32>
    %c0_48 = arith.constant 0 : index
    %c0_49 = arith.constant 0 : index
    %104 = vector.load %arg6[%c0_48, %c0_49] : memref<8x128xf32, #tpu.memory_space<vmem>>, vector<8x128xf32>
    tpu.vector_store %arg6[%c0_48, %c0_49], %103 {strides = array<i32>} : memref<8x128xf32, #tpu.memory_space<vmem>>, vector<8x128xf32>,
    %c512 = arith.constant 512 : index
    %c0_50 = arith.constant 0 : index
    %105 = vector.load %arg2[%c512, %c0_50] : memref<640x256xbf16, #tpu.memory_space<vmem>>, vector<128x128xbf16>
    %106 = arith.truncf %103 : vector<8x128xf32> to vector<8x128xbf16>
    %cst_51 = arith.constant dense<0.000000e+00> : vector<8x128xf32>
    %107 = tpu.matmul %106, %105, %cst_51 {dimension_numbers = #tpu.dot_dimension_numbers<[1], [0], [0], [1], [0, 0, 1, 1], [], []>} : vector<8x128xbf16>, vector<128x128xbf16>, vector<8x128xf32> -> vector<8x128xf32>
    %c6 = arith.constant 6 : index
    %c0_52 = arith.constant 0 : index
    %108 = vector.load %arg3[%c6, %c0_52] : memref<7x256xf32, #tpu.memory_space<vmem>>, vector<1x128xf32>
    %109 = vector.broadcast %108 : vector<1x128xf32> to vector<8x128xf32>
    %110 = arith.addf %107, %109 : vector<8x128xf32>
    %111 = math.tanh %110 : vector<8x128xf32>
    %c0_53 = arith.constant 0 : index
    %c0_54 = arith.constant 0 : index
    %112 = vector.load %arg4[%c0_53, %c0_54] : memref<8x128xf32, #tpu.memory_space<vmem>>, vector<8x128xf32>
    tpu.vector_store %arg4[%c0_53, %c0_54], %111 {strides = array<i32>} : memref<8x128xf32, #tpu.memory_space<vmem>>, vector<8x128xf32>,
    return
  }
  func.func @transform_0(%arg0: i32) -> (i32, i32) {
    %c0_i32 = arith.constant 0 : i32
    %c0_i32_0 = arith.constant 0 : i32
    return %arg0, %c0_i32 : i32, i32
  }
  func.func @transform_1(%arg0: i32) -> (i32, i32) {
    %c0_i32 = arith.constant 0 : i32
    %c0_i32_0 = arith.constant 0 : i32
    %c0_i32_1 = arith.constant 0 : i32
    return %c0_i32, %c0_i32_0 : i32, i32
  }
  func.func @transform_2(%arg0: i32) -> (i32, i32) {
    %c0_i32 = arith.constant 0 : i32
    %c0_i32_0 = arith.constant 0 : i32
    %c0_i32_1 = arith.constant 0 : i32
    return %c0_i32, %c0_i32_0 : i32, i32
  }
  func.func @transform_3(%arg0: i32) -> (i32, i32) {
    %c0_i32 = arith.constant 0 : i32
    %c0_i32_0 = arith.constant 0 : i32
    return %arg0, %c0_i32 : i32, i32
  }
  func.func @transform_4(%arg0: i32) -> (i32, i32) {
    %c0_i32 = arith.constant 0 : i32
    %c0_i32_0 = arith.constant 0 : i32
    return %arg0, %c0_i32 : i32, i32
  }
  func.func @transform_5(%arg0: i32) -> (i32, i32) {
    %c0_i32 = arith.constant 0 : i32
    %c0_i32_0 = arith.constant 0 : i32
    return %arg0, %c0_i32 : i32, i32
  }
}

</mosaic_0001>

<bundles_post_ra>
// kernel: tpu_custom_call.1
= control target key start
LH: loop header
LB: loop body
LE: loop exit
PB: predicated region body
PF: predicated region fallthrough
CT: control target
= control target key end

     0   :  { %11 = vsyncpa [#allocation3], 0  ;;  %s1616_s0 = inlined_call_operand.hbm [shape: f32[8,128], index: 0, kind: input, shape index: {}]   ;;  %s1617_s1 = inlined_call_operand.hbm [shape: bf16[640,256], index: 1, kind: input, shape index: {}]   ;;  %s1618_s2 = inlined_call_operand.hbm [shape: f32[7,256], index: 2, kind: input, shape index: {}]   ;;  %s1619_s3 = inlined_call_operand.hbm [shape: f32[8,128], index: 3, kind: output, shape index: {0}]   ;;  %s1620_s4 = inlined_call_operand.hbm [shape: f32[8,128], index: 4, kind: output, shape index: {1}]   ;;  %s1621_s5 = inlined_call_operand.hbm [shape: f32[8,128], index: 5, kind: output, shape index: {2}]  }
   0x1   :  { %12 = vsyncpa [#allocation6], 0 }
   0x2   :  { %13 = vsyncpa [#allocation4], 0 }
   0x3   :  { %14 = vsyncpa [#allocation10], 0  ;;  %s1439_s18 = smov [#allocation5]   ;;  %s1299_s22 = scalar_lea.hbm %s1617_s1, 10240 }
   0x4   :  { %s30_s19 = sshll.u32 %s1439_s18, 4  ;;  %p1300_p0 = scmp.ne.s32.totalorder %s1617_s1, %s1299_s22  ;;  %s31_s19 = int_to_ptr.vmem [resolvable:$true] %s30_s19 }
   0x5   :  { %p1303_p1 = scmp.lt.u32.totalorder %s1299_s22, %s1617_s1 }
   0x7   :  { %p1305_p2 = pnand %p1303_p1, %p1300_p0 }
   0x9   :  { %1308 = shalt.err (!%p1305_p2)
}
   0xa   :  { %s1309_s27 = scalar_lea.vmem %s31_s19, 10240  ;;  %p1314_p4 = scmp.lt.s32.totalorder %s31_s19, %s31_s19 }
   0xb   :  { %p1310_p3 = scmp.ne.s32.totalorder %s31_s19, %s1309_s27  ;;  %p1315_p5 = scmp.lt.s32.totalorder %s1309_s27, %s1309_s27 }
   0xd   :  { %p1316_p6 = por %p1315_p5, %p1314_p4 }
   0xf   :  { %p1317_p7 = pnand %p1316_p6, %p1310_p3 }
  0x11   :  { %1320 = shalt.err (!%p1317_p7)
}
  0x12   :  { %s1440_s28 = smov 128   ;;  %s1441_s29 = smov 8  }
  0x13   :  { %36 = dma.hbm_to_vmem [thread:$0]  %s1617_s1, 10240, %s31_s19, [#allocation6], %s1440_s28, %s1440_s28, %s1441_s29  }
  0x14   :  { %s1442_s7 = smov [#allocation2]   ;;  %s1443_s9 = smov [#allocation7]  }
  0x15   :  { %s21_s8 = sshll.u32 %s1442_s7, 4  ;;  %s43_s10 = sshll.u32 %s1443_s9, 4  ;;  %s22_s8 = int_to_ptr.vmem [resolvable:$true] %s21_s8  ;;  %s44_s10 = int_to_ptr.vmem [resolvable:$true] %s43_s10 }
  0x16   :  { %s1321_s13 = scalar_lea.hbm %s1616_s0, 128 }
  0x17   :  { %p1322_p8 = scmp.ne.s32.totalorder %s1616_s0, %s1321_s13  ;;  %p1325_p9 = scmp.lt.u32.totalorder %s1321_s13, %s1616_s0 }
  0x19   :  { %p1327_p10 = pnand %p1325_p9, %p1322_p8 }
  0x1b   :  { %1330 = shalt.err (!%p1327_p10)
}
  0x1c   :  { %s1331_s1 = scalar_lea.vmem %s22_s8, 128  ;;  %p1336_p12 = scmp.lt.s32.totalorder %s22_s8, %s22_s8 }
  0x1d   :  { %p1332_p11 = scmp.ne.s32.totalorder %s22_s8, %s1331_s1  ;;  %p1337_p13 = scmp.lt.s32.totalorder %s1331_s1, %s1331_s1 }
  0x1f   :  { %p1338_p0 = por %p1337_p13, %p1336_p12 }
  0x21   :  { %p1339_p1 = pnand %p1338_p0, %p1332_p11 }
  0x23   :  { %1342 = shalt.err (!%p1339_p1)
}
  0x24   :  { %24 = dma.hbm_to_vmem [thread:$0]  %s1616_s0, 128, %s22_s8, [#allocation3]  }
  0x25   :  { %s1343_s22 = scalar_lea.hbm %s1618_s2, 256 }
  0x26   :  { %p1344_p2 = scmp.ne.s32.totalorder %s1618_s2, %s1343_s22  ;;  %p1347_p3 = scmp.lt.u32.totalorder %s1343_s22, %s1618_s2 }
  0x28   :  { %p1349_p4 = pnand %p1347_p3, %p1344_p2 }
  0x2a   :  { %1352 = shalt.err (!%p1349_p4)
}
  0x2b   :  { %s1353_s27 = scalar_lea.vmem %s44_s10, 256  ;;  %p1358_p6 = scmp.lt.s32.totalorder %s44_s10, %s44_s10 }
  0x2c   :  { %p1354_p5 = scmp.ne.s32.totalorder %s44_s10, %s1353_s27  ;;  %p1359_p7 = scmp.lt.s32.totalorder %s1353_s27, %s1353_s27 }
  0x2e   :  { %p1360_p8 = por %p1359_p7, %p1358_p6 }
  0x30   :  { %p1361_p9 = pnand %p1360_p8, %p1354_p5 }
  0x32   :  { %1364 = shalt.err (!%p1361_p9)
}
  0x33   :  { %46 = dma.hbm_to_vmem [thread:$0]  %s1618_s2, 256, %s44_s10, [#allocation6]  }
  0x34   :  { %1431 = dma.done.wait [#allocation3], 128  }
  0x35   :  { %1432 = vsyncadd [#allocation3], 4294967168 }
  0x36   :  { %1433 = dma.done.wait [#allocation6], 10496  }
  0x37   :  { %1434 = vsyncadd [#allocation6], 4294956800  ;;  %v1444_v0 = vmov 0   ;;  %v1445_v1 = vmov 0.0   ;;  %v1205_v2 = vld [vmem:[#allocation5 + $0x4] ss:$8 sps:$4 sm:$0xff]   ;;  %v77_v34 = vlaneseq }
  0x38   :  { %199 = vmatprep.mubr.bf16.mxu0 %v1444_v0  ;;  %1094 = vmatprep.subr.bf16.mxu1 %v1445_v1  ;;  %v1207_v3 = vld [vmem:[#allocation5] ss:$8 sps:$4 sm:$0xff]   ;;  %v1208_v4 = vld [vmem:[#allocation5 + $0x14] ss:$8 sps:$4 sm:$0xff]   ;;  %v1210_v5 = vld [vmem:[#allocation5 + $0x10] ss:$8 sps:$4 sm:$0xff]  }
  0x39   :  { %167 = vmatprep.subr.bf16.mxu0 %v1205_v2  ;;  %v1211_v6 = vld [vmem:[#allocation5 + $0x24] ss:$8 sps:$4 sm:$0xff]   ;;  %v1213_v7 = vld [vmem:[#allocation5 + $0x20] ss:$8 sps:$4 sm:$0xff]   ;;  %v1214_v8 = vld [vmem:[#allocation5 + $0x34] ss:$8 sps:$4 sm:$0xff]  }
  0x3a   :  { %168 = vmatpush1.bf16.msra.mxu0 %v1207_v3  ;;  %v1216_v9 = vld [vmem:[#allocation5 + $0x30] ss:$8 sps:$4 sm:$0xff]   ;;  %v1229_v10 = vld [vmem:[#allocation5 + $0x80] ss:$8 sps:$4 sm:$0xff]   ;;  %v1217_v11 = vld [vmem:[#allocation5 + $0x44] ss:$8 sps:$4 sm:$0xff]  }
  0x3b   :  { %169 = vmatprep.subr.bf16.mxu0 %v1208_v4  ;;  %1095 = vmatpush3.bf16.msra.mxu1 %v1229_v10  ;;  %v1230_v12 = vld [vmem:[#allocation5 + $0x90] ss:$8 sps:$4 sm:$0xff]   ;;  %v1219_v13 = vld [vmem:[#allocation5 + $0x40] ss:$8 sps:$4 sm:$0xff]   ;;  %v1220_v14 = vld [vmem:[#allocation5 + $0x54] ss:$8 sps:$4 sm:$0xff]  }
  0x3c   :  { %1096 = vmatprep.subr.bf16.mxu1 %v1445_v1  ;;  %v1222_v15 = vld [vmem:[#allocation5 + $0x50] ss:$8 sps:$4 sm:$0xff]   ;;  %v1231_v16 = vld [vmem:[#allocation5 + $0xa0] ss:$8 sps:$4 sm:$0xff]   ;;  %v1223_v17 = vld [vmem:[#allocation5 + $0x64] ss:$8 sps:$4 sm:$0xff]  }
  0x3d   :  { %v1232_v18 = vld [vmem:[#allocation5 + $0xb0] ss:$8 sps:$4 sm:$0xff]   ;;  %v1225_v19 = vld [vmem:[#allocation5 + $0x60] ss:$8 sps:$4 sm:$0xff]   ;;  %v1226_v20 = vld [vmem:[#allocation5 + $0x74] ss:$8 sps:$4 sm:$0xff]  }
  0x3e   :  { %170 = vmatpush1.bf16.msra.mxu0 %v1210_v5  ;;  %v1233_v21 = vld [vmem:[#allocation5 + $0xc0] ss:$8 sps:$4 sm:$0xff]   ;;  %v1228_v22 = vld [vmem:[#allocation5 + $0x70] ss:$8 sps:$4 sm:$0xff]   ;;  %vm1446_vm0 = vmmov 0   ;;  %v1536_v35 = vshrl.u32 %v77_v34, 7 }
  0x3f   :  { %171 = vmatprep.subr.bf16.mxu0 %v1211_v6  ;;  %1097 = vmatpush3.bf16.msra.mxu1 %v1230_v12  ;;  %v57_v23 = vld [vmem:[#allocation2] sm:$0xff]  ;;  %v1235_v26 = vld [vmem:[#allocation5 + $0xe0] ss:$8 sps:$4 sm:$0xff]   ;;  %v1237_v28 = vld [vmem:[#allocation5 + $0x84] ss:$8 sps:$4 sm:$0xff]   ;;  %s1447_s2 = smov [#allocation9]  }
  0x40   :  { %1098 = vmatprep.subr.bf16.mxu1 %v1445_v1  ;;  %v1234_v24 = vld [vmem:[#allocation5 + $0xd0] ss:$8 sps:$4 sm:$0xff]   ;;  %v74_v25 = vpack.c.bf16 %v57_v23, %v57_v23  ;;  %1110 = vmatprep.mubr.msk.bf16.mxu1 %vm1446_vm0, %v1445_v1  ;;  %v1238_v29 = vld [vmem:[#allocation5 + $0x94] ss:$8 sps:$4 sm:$0xff]   ;;  %v1239_v30 = vld [vmem:[#allocation5 + $0xa4] ss:$8 sps:$4 sm:$0xff]  }
  0x41   :  { %v1236_v27 = vld [vmem:[#allocation5 + $0xf0] ss:$8 sps:$4 sm:$0xff]   ;;  %v1240_v31 = vld [vmem:[#allocation5 + $0xb4] ss:$8 sps:$4 sm:$0xff]   ;;  %v1241_v32 = vld [vmem:[#allocation5 + $0xc4] ss:$8 sps:$4 sm:$0xff]  }
  0x42   :  { %172 = vmatpush1.bf16.msra.mxu0 %v1213_v7  ;;  %v1242_v33 = vld [vmem:[#allocation5 + $0xd4] ss:$8 sps:$4 sm:$0xff]   ;;  %v83_v36 = vsub.s32 1, %v1536_v35  ;;  %v75_v37 = vld [vmem:[#allocation7] ss:$8 sm:$0x3] }
  0x43   :  { %173 = vmatprep.subr.bf16.mxu0 %v1214_v8  ;;  %1099 = vmatpush3.bf16.msra.mxu1 %v1231_v16  ;;  %v1243_v46 = vld [vmem:[#allocation5 + $0xe4] ss:$8 sps:$4 sm:$0xff]   ;;  %v1244_v47 = vld [vmem:[#allocation5 + $0xf4] ss:$8 sps:$4 sm:$0xff]   ;;  %v227_v48 = vld [vmem:[#allocation7 + $0x1] ss:$0 sm:$0xff] }
  0x44   :  { %1100 = vmatprep.subr.bf16.mxu1 %v1445_v1  ;;  %v84_v38 = vrot.slane %v75_v37, %v83_v36  ;;  %v79_v56 = vsub.s32 0, %v1536_v35  ;;  %v334_v58 = vld [vmem:[#allocation7 + $0x9] ss:$0 sm:$0xff]  ;;  %v1247_v6 = vld [vmem:[#allocation5 + $0x104] ss:$8 sps:$4 sm:$0xff]   ;;  %s950_s29 = sshll.u32 %s1447_s2, 4  ;;  %s951_s29 = int_to_ptr.vmem [resolvable:$true] %s950_s29 }
  0x45   :  { %v1245_v5 = vld [vmem:[#allocation5 + $0x100] ss:$8 sps:$4 sm:$0xff]   ;;  %v1250_v7 = vld [vmem:[#allocation5 + $0x114] ss:$8 sps:$4 sm:$0xff]   ;;  %v1248_v8 = vld [vmem:[#allocation5 + $0x110] ss:$8 sps:$4 sm:$0xff]   ;;  %p1370_p11 = scmp.lt.s32.totalorder %s951_s29, %s951_s29 }
  0x46   :  { %174 = vmatpush1.bf16.msra.mxu0 %v1216_v9  ;;  %v80_v57 = vrot.slane %v75_v37, %v79_v56  ;;  %v1253_v9 = vld [vmem:[#allocation5 + $0x124] ss:$8 sps:$4 sm:$0xff]   ;;  %v1251_v10 = vld [vmem:[#allocation5 + $0x120] ss:$8 sps:$4 sm:$0xff]   ;;  %v1254_v16 = vld [vmem:[#allocation5 + $0x130] ss:$8 sps:$4 sm:$0xff]  }
  0x47   :  { %175 = vmatprep.subr.bf16.mxu0 %v1217_v11  ;;  %1101 = vmatpush3.bf16.msra.mxu1 %v1232_v18  ;;  %v1257_v18 = vld [vmem:[#allocation5 + $0x140] ss:$8 sps:$4 sm:$0xff]   ;;  %v1268_v23 = vld [vmem:[#allocation5 + $0x174] ss:$8 sps:$4 sm:$0xff]   ;;  %s1365_s30 = scalar_lea.vmem %s951_s29, 128 }
  0x48   :  { %1102 = vmatprep.subr.bf16.mxu1 %v1445_v1  ;;  %v437_v37 = vld [vmem:[#allocation7 + $0x2] ss:$0 sm:$0xff]  ;;  %p1366_p10 = scmp.ne.s32.totalorder %s951_s29, %s1365_s30  ;;  %p1371_p12 = scmp.lt.s32.totalorder %s1365_s30, %s1365_s30 }
  0x4a   :  { %176 = vmatpush1.bf16.msra.mxu0 %v1219_v13  ;;  %p1372_p13 = por %p1371_p12, %p1370_p11 }
  0x4b   :  { %177 = vmatprep.subr.bf16.mxu0 %v1220_v14  ;;  %1103 = vmatpush3.bf16.msra.mxu1 %v1233_v21  ;;  %v1265_v21 = vld [vmem:[#allocation5 + $0x164] ss:$8 sps:$4 sm:$0xff]  }
  0x4c   :  { %1104 = vmatprep.subr.bf16.mxu1 %v1445_v1  ;;  %p1373_p0 = pnand %p1372_p13, %p1366_p10 }
  0x4e   :  { %178 = vmatpush1.bf16.msra.mxu0 %v1222_v15  ;;  %v1256_v15 = vld [vmem:[#allocation5 + $0x134] ss:$8 sps:$4 sm:$0xff]  }
  0x4f   :  { %179 = vmatprep.subr.bf16.mxu0 %v1223_v17  ;;  %1105 = vmatpush3.bf16.msra.mxu1 %v1234_v24  ;;  %v1259_v17 = vld [vmem:[#allocation5 + $0x144] ss:$8 sps:$4 sm:$0xff]   ;;  %v1266_v24 = vld [vmem:[#allocation5 + $0x170] ss:$8 sps:$4 sm:$0xff]  }
  0x50   :  { %1106 = vmatprep.subr.bf16.mxu1 %v1445_v1 }
  0x52   :  { %180 = vmatpush1.bf16.msra.mxu0 %v1225_v19  ;;  %v1262_v19 = vld [vmem:[#allocation5 + $0x154] ss:$8 sps:$4 sm:$0xff]  }
  0x53   :  { %181 = vmatprep.subr.bf16.mxu0 %v1226_v20  ;;  %1107 = vmatpush3.bf16.msra.mxu1 %v1235_v26  ;;  %v1260_v20 = vld [vmem:[#allocation5 + $0x150] ss:$8 sps:$4 sm:$0xff]  }
  0x54   :  { %1108 = vmatprep.subr.bf16.mxu1 %v1445_v1  ;;  %v1270_v26 = vld [vmem:[#allocation5 + $0x190] ss:$8 sps:$4 sm:$0xff]  }
  0x56   :  { %182 = vmatpush1.bf16.msra.mxu0 %v1228_v22  ;;  %v1263_v22 = vld [vmem:[#allocation5 + $0x160] ss:$8 sps:$4 sm:$0xff]  }
  0x57   :  { %1114 = vmatprep.subr.bf16.mxu0 %v1445_v1  ;;  %1109 = vmatpush3.bf16.msra.mxu1 %v1236_v27  ;;  %v1271_v27 = vld [vmem:[#allocation5 + $0x1a0] ss:$8 sps:$4 sm:$0xff]  }
  0x58   :  { %552 = vmatprep.subr.bf16.mxu1 %v1247_v6 }
  0x59   :  { %200 = vmatmul.mubr.bf16.vlgmr.msra.gmra.mrb[0].mxu0 %v74_v25  ;;  %v1269_v25 = vld [vmem:[#allocation5 + $0x180] ss:$8 sps:$4 sm:$0xff]  }
  0x5a   :  { %1130 = vmatprep.mubr.msk.bf16.mxu0 %vm1446_vm0, %v1445_v1  ;;  %1115 = vmatpush3.bf16.msra.mxu0 %v1237_v28  ;;  %v1272_v28 = vld [vmem:[#allocation5 + $0x1b0] ss:$8 sps:$4 sm:$0xff]  }
  0x5b   :  { %1116 = vmatprep.subr.bf16.mxu0 %v1445_v1 }
  0x5e   :  { %1117 = vmatpush3.bf16.msra.mxu0 %v1238_v29  ;;  %v1273_v29 = vld [vmem:[#allocation5 + $0x1c0] ss:$8 sps:$4 sm:$0xff]  }
  0x5f   :  { %1118 = vmatprep.subr.bf16.mxu0 %v1445_v1 }
  0x62   :  { %1119 = vmatpush3.bf16.msra.mxu0 %v1239_v30  ;;  %v1274_v30 = vld [vmem:[#allocation5 + $0x1d0] ss:$8 sps:$4 sm:$0xff]  }
  0x63   :  { %1120 = vmatprep.subr.bf16.mxu0 %v1445_v1 }
  0x66   :  { %1121 = vmatpush3.bf16.msra.mxu0 %v1240_v31 }
  0x67   :  { %1122 = vmatprep.subr.bf16.mxu0 %v1445_v1 }
  0x6a   :  { %1123 = vmatpush3.bf16.msra.mxu0 %v1241_v32 }
  0x6b   :  { %1124 = vmatprep.subr.bf16.mxu0 %v1445_v1 }
  0x6e   :  { %1125 = vmatpush3.bf16.msra.mxu0 %v1242_v33 }
  0x6f   :  { %1126 = vmatprep.subr.bf16.mxu0 %v1445_v1 }
  0x72   :  { %1127 = vmatpush3.bf16.msra.mxu0 %v1243_v46  ;;  %v1278_v46 = vld [vmem:[#allocation5 + $0x194] ss:$8 sps:$4 sm:$0xff]  }
  0x73   :  { %1128 = vmatprep.subr.bf16.mxu0 %v1445_v1 }
  0x76   :  { %1129 = vmatpush3.bf16.msra.mxu0 %v1244_v47  ;;  %v1279_v47 = vld [vmem:[#allocation5 + $0x1a4] ss:$8 sps:$4 sm:$0xff]  }
  0x77   :  { %1134 = vmatprep.subr.bf16.mxu0 %v1445_v1 }
 0x12c   :  { %v201_v39 = vpop.f32.mrb[0].mxu0 }
 0x12d   :  { %v203_v40 = vpop.f32.mrb[1].mxu0  ;;  %v202_v59 = vadd.f32 %v201_v39, %v80_v57  ;;  %v438_v39 = vld [vmem:[#allocation7 + $0xa] ss:$0 sm:$0xff] }
 0x12e   :  { %v204_v41 = vadd.f32 %v203_v40, %v84_v38  ;;  %v205_v42 = vpop.f32.mrb[2].mxu0 }
 0x12f   :  { %v206_v43 = vpop.f32.mrb[3].mxu0 }
 0x130   :  { %v209_v44 = vmax.f32 %v204_v41, 0.0  ;;  %v1275_v43 = vld [vmem:[#allocation5 + $0x1e0] ss:$8 sps:$4 sm:$0xff]  }
 0x132   :  { %v226_v45 = vpack.c.bf16 %v209_v44, %v209_v44  ;;  %v1276_v44 = vld [vmem:[#allocation5 + $0x1f0] ss:$8 sps:$4 sm:$0xff]  }
 0x134   :  { %1111 = vmatmul.mubr.bf16.vlgmr.msra.gmra.mrb[0].mxu1 %v226_v45  ;;  %v1277_v45 = vld [vmem:[#allocation5 + $0x184] ss:$8 sps:$4 sm:$0xff]  }
 0x135   :  { %584 = vmatprep.mubr.bf16.mxu1 %v1444_v0  ;;  %v208_v0 = vmax.f32 %v202_v59, 0.0  ;;  %553 = vmatpush1.bf16.msra.mxu1 %v1245_v5 }
 0x136   :  { %554 = vmatprep.subr.bf16.mxu1 %v1250_v7 }
 0x139   :  { %555 = vmatpush1.bf16.msra.mxu1 %v1248_v8  ;;  %v719_v8 = vld [vmem:[#allocation7 + $0xc] ss:$0 sm:$0xff] }
 0x13a   :  { %556 = vmatprep.subr.bf16.mxu1 %v1253_v9 }
 0x13d   :  { %557 = vmatpush1.bf16.msra.mxu1 %v1251_v10 }
 0x13e   :  { %558 = vmatprep.subr.bf16.mxu1 %v1256_v15 }
 0x141   :  { %559 = vmatpush1.bf16.msra.mxu1 %v1254_v16 }
 0x142   :  { %560 = vmatprep.subr.bf16.mxu1 %v1259_v17 }
 0x145   :  { %561 = vmatpush1.bf16.msra.mxu1 %v1257_v18  ;;  %v1285_v18 = vld [vmem:[#allocation5 + $0x200] ss:$8 sps:$4 sm:$0xff]  }
 0x146   :  { %562 = vmatprep.subr.bf16.mxu1 %v1262_v19  ;;  %v1286_v19 = vld [vmem:[#allocation5 + $0x210] ss:$8 sps:$4 sm:$0xff]  }
 0x149   :  { %563 = vmatpush1.bf16.msra.mxu1 %v1260_v20 }
 0x14a   :  { %564 = vmatprep.subr.bf16.mxu1 %v1265_v21 }
 0x14d   :  { %565 = vmatpush1.bf16.msra.mxu1 %v1263_v22  ;;  %v1287_v22 = vld [vmem:[#allocation5 + $0x220] ss:$8 sps:$4 sm:$0xff]  }
 0x14e   :  { %566 = vmatprep.subr.bf16.mxu1 %v1268_v23  ;;  %v1288_v23 = vld [vmem:[#allocation5 + $0x230] ss:$8 sps:$4 sm:$0xff]  }
 0x151   :  { %567 = vmatpush1.bf16.msra.mxu1 %v1266_v24  ;;  %v1289_v24 = vld [vmem:[#allocation5 + $0x240] ss:$8 sps:$4 sm:$0xff]  }
 0x152   :  { %1154 = vmatprep.subr.bf16.mxu1 %v1445_v1 }
 0x207   :  { %v310_v49 = vpop.f32.mrb[0].mxu1 }
 0x208   :  { %v311_v50 = vadd.f32 %v310_v49, %v227_v48  ;;  %v1112_v51 = vpop.f32.mrb[1].mxu1  ;;  %v1280_v48 = vld [vmem:[#allocation5 + $0x1b4] ss:$8 sps:$4 sm:$0xff]   ;;  %v1281_v49 = vld [vmem:[#allocation5 + $0x1c4] ss:$8 sps:$4 sm:$0xff]  }
 0x209   :  { %v313_v52 = vpop.f32.mrb[2].mxu1  ;;  %v460_v51 = vld [vmem:[#allocation7 + $0x3] ss:$8 sm:$0x3] }
 0x20a   :  { %v316_v53 = vmax.f32 %v311_v50, 0.0  ;;  %v1113_v54 = vpop.f32.mrb[3].mxu1  ;;  %v1282_v50 = vld [vmem:[#allocation5 + $0x1d4] ss:$8 sps:$4 sm:$0xff]   ;;  %v469_v52 = vrot.slane %v460_v51, %v83_v36  ;;  %v465_v7 = vrot.slane %v460_v51, %v79_v56 }
 0x20c   :  { %v333_v55 = vpack.c.bf16 %v316_v53, %v316_v53 }
 0x20e   :  { %1131 = vmatmul.mubr.bf16.vlgmr.msra.gmra.mrb[4].mxu0 %v333_v55 }
 0x20f   :  { %1150 = vmatprep.mubr.msk.bf16.mxu0 %vm1446_vm0, %v1445_v1  ;;  %1135 = vmatpush3.bf16.msra.mxu0 %v1269_v25  ;;  %v1290_v25 = vld [vmem:[#allocation5 + $0x250] ss:$8 sps:$4 sm:$0xff]  }
 0x210   :  { %1136 = vmatprep.subr.bf16.mxu0 %v1445_v1 }
 0x213   :  { %1137 = vmatpush3.bf16.msra.mxu0 %v1270_v26  ;;  %v1291_v26 = vld [vmem:[#allocation5 + $0x260] ss:$8 sps:$4 sm:$0xff]  }
 0x214   :  { %1138 = vmatprep.subr.bf16.mxu0 %v1445_v1 }
 0x217   :  { %1139 = vmatpush3.bf16.msra.mxu0 %v1271_v27  ;;  %v1292_v27 = vld [vmem:[#allocation5 + $0x270] ss:$8 sps:$4 sm:$0xff]  }
 0x218   :  { %1140 = vmatprep.subr.bf16.mxu0 %v1445_v1 }
 0x21b   :  { %1141 = vmatpush3.bf16.msra.mxu0 %v1272_v28 }
 0x21c   :  { %1142 = vmatprep.subr.bf16.mxu0 %v1445_v1 }
 0x21f   :  { %1143 = vmatpush3.bf16.msra.mxu0 %v1273_v29 }
 0x220   :  { %1144 = vmatprep.subr.bf16.mxu0 %v1445_v1 }
 0x223   :  { %1145 = vmatpush3.bf16.msra.mxu0 %v1274_v30 }
 0x224   :  { %1146 = vmatprep.subr.bf16.mxu0 %v1445_v1 }
 0x227   :  { %1147 = vmatpush3.bf16.msra.mxu0 %v1275_v43 }
 0x228   :  { %1148 = vmatprep.subr.bf16.mxu0 %v1445_v1 }
 0x22b   :  { %1149 = vmatpush3.bf16.msra.mxu0 %v1276_v44 }
 0x22c   :  { %1174 = vmatprep.subr.bf16.mxu0 %v1445_v1 }
 0x2e1   :  { %v417_v60 = vpop.f32.mrb[4].mxu0 }
 0x2e2   :  { %v418_v61 = vadd.f32 %v417_v60, %v334_v58  ;;  %v1132_v62 = vpop.f32.mrb[5].mxu0 }
 0x2e3   :  { %v420_v63 = vpop.f32.mrb[6].mxu0  ;;  %v1284_v62 = vld [vmem:[#allocation5 + $0x1f4] ss:$8 sps:$4 sm:$0xff]  }
 0x2e4   :  { %v423_v2 = vmax.f32 %v418_v61, 0.0  ;;  %v1133_v3 = vpop.f32.mrb[7].mxu0  ;;  %v1283_v61 = vld [vmem:[#allocation5 + $0x1e4] ss:$8 sps:$4 sm:$0xff]  }
 0x2e5   :  { %v612_v63 = vld [vmem:[#allocation7 + $0x4] ss:$0 sm:$0xff] }
 0x2e6   :  { %v424_v4 = vadd.f32 %v423_v2, %v208_v0 }
 0x2e8   :  { %425 = vadd.xlane.f32.xlu0 %v424_v4 }
 0x375   :  { %v426_v11 = vpop.xlane.xlu0 %425 }
 0x376   :  { %v428_v12 = vmul.f32 0.0078125, %v426_v11 }
 0x378   :  { %v429_v13 = vsub.f32 %v424_v4, %v428_v12 }
 0x37a   :  { %v430_v14 = vmul.f32 %v429_v13, %v429_v13 }
 0x37c   :  { %431 = vadd.xlane.f32.xlu0 %v430_v14 }
 0x409   :  { %v432_v31 = vpop.xlane.xlu0 %431 }
 0x40a   :  { %v433_v32 = vmul.f32 0.0078125, %v432_v31 }
 0x40c   :  { %v434_v33 = vadd.f32 1e-05, %v433_v32  ;;  %v821_v32 = vld [vmem:[#allocation7 + $0x5] ss:$0 sm:$0xff] }
 0x40e   :  { %1293 = vrsqrt.f32 %v434_v33 }
 0x418   :  { %v1294_v34 = vpop.eup %1293 }
 0x419   :  { %v436_v38 = vmul.f32 %v1294_v34, %v429_v13  ;;  %v822_v34 = vld [vmem:[#allocation7 + $0xd] ss:$0 sm:$0xff] }
 0x41b   :  { %v439_v40 = vmul.f32 %v437_v37, %v436_v38 }
 0x41d   :  { %v440_v41 = vadd.f32 %v439_v40, %v438_v39 }
 0x41f   :  { %v458_v42 = vpack.c.bf16 %v440_v41, %v440_v41  ;;  %441 = vst [vmem:[#allocation9] sm:$0xff] %v440_v41 }
 0x421   :  { %585 = vmatmul.mubr.bf16.vlgmr.msra.gmra.mrb[4].mxu1 %v458_v42 }
 0x422   :  { %1170 = vmatprep.mubr.msk.bf16.mxu1 %vm1446_vm0, %v1445_v1  ;;  %1155 = vmatpush3.bf16.msra.mxu1 %v1277_v45 }
 0x423   :  { %1156 = vmatprep.subr.bf16.mxu1 %v1445_v1 }
 0x426   :  { %1157 = vmatpush3.bf16.msra.mxu1 %v1278_v46 }
 0x427   :  { %1158 = vmatprep.subr.bf16.mxu1 %v1445_v1 }
 0x42a   :  { %1159 = vmatpush3.bf16.msra.mxu1 %v1279_v47 }
 0x42b   :  { %1160 = vmatprep.subr.bf16.mxu1 %v1445_v1 }
 0x42e   :  { %1161 = vmatpush3.bf16.msra.mxu1 %v1280_v48 }
 0x42f   :  { %1162 = vmatprep.subr.bf16.mxu1 %v1445_v1 }
 0x432   :  { %1163 = vmatpush3.bf16.msra.mxu1 %v1281_v49 }
 0x433   :  { %1164 = vmatprep.subr.bf16.mxu1 %v1445_v1 }
 0x436   :  { %1165 = vmatpush3.bf16.msra.mxu1 %v1282_v50 }
 0x437   :  { %1166 = vmatprep.subr.bf16.mxu1 %v1445_v1 }
 0x43a   :  { %1167 = vmatpush3.bf16.msra.mxu1 %v1283_v61 }
 0x43b   :  { %1168 = vmatprep.subr.bf16.mxu1 %v1445_v1 }
 0x43e   :  { %1169 = vmatpush3.bf16.msra.mxu1 %v1284_v62 }
 0x4f4   :  { %v586_v53 = vpop.f32.mrb[4].mxu1 }
 0x4f5   :  { %v588_v54 = vpop.f32.mrb[5].mxu1  ;;  %v587_v9 = vadd.f32 %v586_v53, %v465_v7 }
 0x4f6   :  { %v589_v55 = vadd.f32 %v588_v54, %v469_v52  ;;  %v590_v57 = vpop.f32.mrb[6].mxu1 }
 0x4f7   :  { %v591_v58 = vpop.f32.mrb[7].mxu1  ;;  %v593_v14 = vmax.f32 %v587_v9, 0.0 }
 0x4f8   :  { %v594_v59 = vmax.f32 %v589_v55, 0.0 }
 0x4fa   :  { %v611_v60 = vpack.c.bf16 %v594_v59, %v594_v59 }
 0x4fc   :  { %1151 = vmatmul.mubr.bf16.vlgmr.msra.gmra.mrb[8].mxu0 %v611_v60 }
 0x4fd   :  { %1190 = vmatprep.mubr.msk.bf16.mxu0 %vm1446_vm0, %v1445_v1  ;;  %1175 = vmatpush3.bf16.msra.mxu0 %v1285_v18 }
 0x4fe   :  { %1176 = vmatprep.subr.bf16.mxu0 %v1445_v1 }
 0x501   :  { %1177 = vmatpush3.bf16.msra.mxu0 %v1286_v19 }
 0x502   :  { %1178 = vmatprep.subr.bf16.mxu0 %v1445_v1 }
 0x505   :  { %1179 = vmatpush3.bf16.msra.mxu0 %v1287_v22 }
 0x506   :  { %1180 = vmatprep.subr.bf16.mxu0 %v1445_v1 }
 0x509   :  { %1181 = vmatpush3.bf16.msra.mxu0 %v1288_v23 }
 0x50a   :  { %1182 = vmatprep.subr.bf16.mxu0 %v1445_v1 }
 0x50d   :  { %1183 = vmatpush3.bf16.msra.mxu0 %v1289_v24 }
 0x50e   :  { %1184 = vmatprep.subr.bf16.mxu0 %v1445_v1 }
 0x511   :  { %1185 = vmatpush3.bf16.msra.mxu0 %v1290_v25 }
 0x512   :  { %1186 = vmatprep.subr.bf16.mxu0 %v1445_v1 }
 0x515   :  { %1187 = vmatpush3.bf16.msra.mxu0 %v1291_v26 }
 0x516   :  { %1188 = vmatprep.subr.bf16.mxu0 %v1445_v1 }
 0x519   :  { %1189 = vmatpush3.bf16.msra.mxu0 %v1292_v27 }
 0x5cf   :  { %v695_v0 = vpop.f32.mrb[8].mxu0 }
 0x5d0   :  { %v696_v36 = vadd.f32 %v695_v0, %v612_v63  ;;  %v1152_v2 = vpop.f32.mrb[9].mxu0 }
 0x5d1   :  { %v698_v3 = vpop.f32.mrb[10].mxu0 }
 0x5d2   :  { %v701_v4 = vmax.f32 %v696_v36, 0.0  ;;  %v1153_v5 = vpop.f32.mrb[11].mxu0 }
 0x5d4   :  { %v718_v6 = vpack.c.bf16 %v701_v4, %v701_v4 }
 0x5d6   :  { %1171 = vmatmul.mubr.bf16.vlgmr.msra.gmra.mrb[8].mxu1 %v718_v6 }
 0x6a9   :  { %v802_v10 = vpop.f32.mrb[8].mxu1 }
 0x6aa   :  { %v803_v11 = vadd.f32 %v802_v10, %v719_v8  ;;  %v1172_v12 = vpop.f32.mrb[9].mxu1 }
 0x6ab   :  { %v805_v13 = vpop.f32.mrb[10].mxu1 }
 0x6ac   :  { %v808_v15 = vmax.f32 %v803_v11, 0.0  ;;  %v1173_v16 = vpop.f32.mrb[11].mxu1 }
 0x6ae   :  { %v809_v17 = vadd.f32 %v808_v15, %v593_v14 }
 0x6b0   :  { %810 = vadd.xlane.f32.xlu1 %v809_v17 }
 0x73d   :  { %v811_v35 = vpop.xlane.xlu1 %810 }
 0x73e   :  { %v812_v56 = vmul.f32 0.0078125, %v811_v35 }
 0x740   :  { %v813_v20 = vsub.f32 %v809_v17, %v812_v56 }
 0x742   :  { %v814_v21 = vmul.f32 %v813_v20, %v813_v20 }
 0x744   :  { %815 = vadd.xlane.f32.xlu1 %v814_v21 }
 0x7d1   :  { %v816_v28 = vpop.xlane.xlu1 %815 }
 0x7d2   :  { %v817_v29 = vmul.f32 0.0078125, %v816_v28 }
 0x7d4   :  { %v818_v30 = vadd.f32 1e-05, %v817_v29 }
 0x7d6   :  { %1295 = vrsqrt.f32 %v818_v30 }
 0x7e0   :  { %v1296_v31 = vpop.eup %1295 }
 0x7e1   :  { %v820_v33 = vmul.f32 %v1296_v31, %v813_v20 }
 0x7e3   :  { %v823_v37 = vmul.f32 %v821_v32, %v820_v33 }
 0x7e5   :  { %v824_v38 = vadd.f32 %v823_v37, %v822_v34 }
 0x7e7   :  { %v842_v39 = vpack.c.bf16 %v824_v38, %v824_v38  ;;  %825 = vst [vmem:[#allocation11] sm:$0xff] %v824_v38 }
 0x7e9   :  { %1191 = vmatmul.mubr.bf16.vlgmr.msra.gmra.mrb[12].mxu0 %v842_v39 }
 0x7ea   :  { %1376 = shalt.err (!%p1373_p0)
}
 0x7eb   :  { %s1377_s8 = scalar_lea.hbm %s1620_s4, 128 }
 0x7ec   :  { %p1378_p1 = scmp.ne.s32.totalorder %s1620_s4, %s1377_s8  ;;  %p1381_p2 = scmp.lt.u32.totalorder %s1377_s8, %s1620_s4 }
 0x7ee   :  { %p1383_p3 = pnand %p1381_p2, %p1378_p1 }
 0x7f0   :  { %1386 = shalt.err (!%p1383_p3)
}
 0x7f1   :  { %953 = dma.vmem_to_hbm [thread:$0]  %s951_s29, 128, %s1620_s4, [#allocation10]  }
 0x7f2   :  { %s1448_s15 = smov [#allocation11]  }
 0x7f3   :  { %s960_s16 = sshll.u32 %s1448_s15, 4  ;;  %s961_s16 = int_to_ptr.vmem [resolvable:$true] %s960_s16 }
 0x7f4   :  { %s1387_s17 = scalar_lea.vmem %s961_s16, 128  ;;  %p1392_p5 = scmp.lt.s32.totalorder %s961_s16, %s961_s16 }
 0x7f5   :  { %p1388_p4 = scmp.ne.s32.totalorder %s961_s16, %s1387_s17  ;;  %p1393_p6 = scmp.lt.s32.totalorder %s1387_s17, %s1387_s17 }
 0x7f7   :  { %p1394_p7 = por %p1393_p6, %p1392_p5 }
 0x7f9   :  { %p1395_p8 = pnand %p1394_p7, %p1388_p4 }
 0x7fb   :  { %1398 = shalt.err (!%p1395_p8)
}
 0x7fc   :  { %s1399_s19 = scalar_lea.hbm %s1621_s5, 128 }
 0x7fd   :  { %p1400_p9 = scmp.ne.s32.totalorder %s1621_s5, %s1399_s19  ;;  %p1403_p10 = scmp.lt.u32.totalorder %s1399_s19, %s1621_s5 }
 0x7ff   :  { %p1405_p11 = pnand %p1403_p10, %p1400_p9 }
 0x801   :  { %1408 = shalt.err (!%p1405_p11)
}
 0x802   :  { %963 = dma.vmem_to_hbm [thread:$0]  %s961_s16, 128, %s1621_s5, [#allocation10]   ;;  %v843_v1 = vld [vmem:[#allocation7 + $0x6] ss:$0 sm:$0xff] }
 0x803   :  { %s1449_s25 = smov [#allocation8]  }
 0x804   :  { %s940_s26 = sshll.u32 %s1449_s25, 4  ;;  %s941_s26 = int_to_ptr.vmem [resolvable:$true] %s940_s26 }
 0x805   :  { %s1409_s27 = scalar_lea.vmem %s941_s26, 128  ;;  %p1414_p13 = scmp.lt.s32.totalorder %s941_s26, %s941_s26 }
 0x806   :  { %p1410_p12 = scmp.ne.s32.totalorder %s941_s26, %s1409_s27  ;;  %p1415_p0 = scmp.lt.s32.totalorder %s1409_s27, %s1409_s27 }
 0x808   :  { %p1416_p1 = por %p1415_p0, %p1414_p13 }
 0x80a   :  { %p1417_p2 = pnand %p1416_p1, %p1410_p12 }
 0x8bc   :  { %v926_v40 = vpop.f32.mrb[12].mxu0 }
 0x8bd   :  { %v927_v41 = vadd.f32 %v926_v40, %v843_v1  ;;  %v1192_v42 = vpop.f32.mrb[13].mxu0 }
 0x8be   :  { %v929_v43 = vpop.f32.mrb[14].mxu0 }
 0x8bf   :  { %1297 = vtanh.f32 %v927_v41  ;;  %v1193_v44 = vpop.f32.mrb[15].mxu0 }
 0x8c9   :  { %v1298_v45 = vpop.eup %1297 }
 0x8ca   :  { %933 = vst [vmem:[#allocation8] sm:$0xff] %v1298_v45 }
 0x8cb   :  { %1420 = shalt.err (!%p1417_p2)
}
 0x8cc   :  { %s1421_s28 = scalar_lea.hbm %s1619_s3, 128 }
 0x8cd   :  { %p1422_p3 = scmp.ne.s32.totalorder %s1619_s3, %s1421_s28  ;;  %p1425_p4 = scmp.lt.u32.totalorder %s1421_s28, %s1619_s3 }
 0x8cf   :  { %p1427_p5 = pnand %p1425_p4, %p1422_p3 }
 0x8d1   :  { %1430 = shalt.err (!%p1427_p5)
}
 0x8d2   :  { %943 = dma.vmem_to_hbm [thread:$0]  %s941_s26, 128, %s1619_s3, [#allocation4]  }
 0x8d3   :  { %1435 = dma.done.wait [#allocation4], 128  }
 0x8d4   :  { %1436 = vsyncadd [#allocation4], 4294967168 }
 0x8d5   :  { %1437 = dma.done.wait [#allocation10], 256  }
 0x8d6   :  { %1438 = vsyncadd [#allocation10], 4294967040 }
 0x8d7   :  { %973 = vsyncpa [#allocation3], 1 }
 0x8d8   :  { %974 = vsyncpa [#allocation6], 1 }
 0x8d9   :  { %975 = vsyncpa [#allocation4], 1 }
 0x8da   :  { %976 = vsyncpa [#allocation10], 1 }

</bundles_post_ra>
